<compile_context>
chip_gen: v7x
topology: tpu7x:2x2x1
jax: 0.10.0
libtpu: 0.0.40
codegen_flags: <defaults>
</compile_context>

<pallas_src>
import jax
import jax.numpy as jnp
from jax.experimental import pallas as pl
from jax.experimental.pallas import tpu as pltpu

_HALO = 128  # right-halo width per tile (one lane group); requires K - 1 <= 128


def _circ_conv_kernel(w_ref, b_ref, xm_ref, xh_ref, o_ref):
    # w_ref : (K, C, C)    per-tap weights, w_ref[k][o, i] == weight[o, i, k]
    # b_ref : (C, 1)       bias (f32)
    # xm_ref: (1, C, TL)   main input tile   (compute dtype, lanes = length)
    # xh_ref: (1, C, 128)  right halo tile   (compute dtype)
    # o_ref : (1, C, TL)   output tile       (f32)
    k_taps = w_ref.shape[0]
    tl = xm_ref.shape[-1]
    # (C, TL + 128) window; both pieces are 128-lane multiples.
    window = jnp.concatenate([xm_ref[0], xh_ref[0]], axis=-1)
    acc = jnp.zeros(o_ref.shape[1:], jnp.float32)
    for k in range(k_taps):  # K is small & static -> unrolled
        acc = acc + jnp.dot(w_ref[k], window[:, k:k + tl],
                            preferred_element_type=jnp.float32)
    o_ref[0] = (acc + b_ref[...]).astype(o_ref.dtype)


def _choose_lane_tile(L, N, C, stream_itemsize, out_itemsize):
    """Pick the output lane-tile width TL (always a multiple of 128)."""
    lane = 128
    l_r = -(-L // lane) * lane
    # double-buffered main + out tile bytes per lane column (halo/weights tiny)
    per_lane = 2 * C * (stream_itemsize + out_itemsize)
    budget = 20 * 1024 * 1024                     # v7x-safe (64 MiB physical VMEM)
    vmem_cap = max(lane, (budget // per_lane) // lane * lane)
    cap = min(l_r, vmem_cap, 8192)
    cands = [t for t in (8192, 4096, 2048, 1024, 512, 256, 128) if t <= cap] or [lane]

    def steps(t):
        return N * (-(-L // t))

    tl = cands[0]
    # Prefer >= 8 total grid steps (pipelining + both v7x TensorCores), then
    # >= 4, while keeping tiles >= 512 lanes (already ~85% of HBM roofline).
    for min_steps in (8, 4):
        good = [t for t in cands if t >= 512 and steps(t) >= min_steps]
        if good:
            tl = max(good)
            break
    # Avoid padding L when a similar-size 128-multiple divisor exists.
    if L % tl:
        divs = [t for t in range(tl, lane - 1, -lane) if L % t == 0]
        if divs:
            tl = divs[0]
    return tl


def my_circ_conv(x, weight, bias, adjacent, *, compute_dtype=jnp.bfloat16):
    """Replicates MyCircConv.forward.

    x      : (N, C, L) float32
    weight : (C, C, 2*adjacent+1)   (out_ch, in_ch, tap)
    bias   : (C,)
    returns (x_padded, conv_out) with shapes (N, C, L+2*adjacent), (N, C, L)
    """
    N, C, L = x.shape
    K = 2 * adjacent + 1
    assert weight.shape == (C, C, K) and bias.shape == (C,)
    assert K - 1 <= _HALO, "adjacent > 64 not supported by the 128-lane halo"
    # TODO(synk): widen the halo block (multiple lane groups) for adjacent > 64.

    # Circular padding == torch.cat([x[..., -a:], x, x[..., :a]], dim=2).
    if adjacent > 0:
        x_padded = jnp.concatenate([x[..., -adjacent:], x, x[..., :adjacent]], axis=2)
    else:
        x_padded = x
    Lp = L + K - 1  # padded length

    itemsize = jnp.dtype(compute_dtype).itemsize
    TL = _choose_lane_tile(L, N, C, itemsize, jnp.dtype(x.dtype).itemsize)
    n_lt = -(-L // TL)
    L_pad = n_lt * TL

    # Streamed operand: x_padded, zero-extended to L_pad + 128 lanes and cast
    # to the compute dtype (bf16).  The zero tail only feeds output columns
    # >= L, which are sliced off.
    stream_len = L_pad + _HALO
    x_stream = jnp.pad(
        x_padded, ((0, 0), (0, 0), (0, stream_len - Lp))
    ).astype(compute_dtype)

    w_k = jnp.transpose(weight, (2, 0, 1)).astype(compute_dtype)   # (K, C, C)
    bias2d = bias.reshape(C, 1).astype(jnp.float32)

    grid = (N, n_lt)   # last axis fastest -> consecutive steps stream contiguous L
    lane_blk = TL // _HALO

    out_pad = pl.pallas_call(
        _circ_conv_kernel,
        out_shape=jax.ShapeDtypeStruct((N, C, L_pad), x.dtype),
        grid_spec=pltpu.PrefetchScalarGridSpec(
            num_scalar_prefetch=0,
            grid=grid,
            in_specs=[
                pl.BlockSpec((K, C, C), lambda n, j: (0, 0, 0)),   # weights (resident)
                pl.BlockSpec((C, 1), lambda n, j: (0, 0)),         # bias (resident)
                pl.BlockSpec((1, C, TL), lambda n, j: (n, 0, j)),  # main tile
                # right halo: same array, next 128 lanes after the main tile
                pl.BlockSpec((1, C, _HALO),
                             lambda n, j: (n, 0, (j + 1) * lane_blk)),
            ],
            out_specs=pl.BlockSpec((1, C, TL), lambda n, j: (n, 0, j)),
        ),
        compiler_params=pltpu.CompilerParams(
            dimension_semantics=("parallel", "parallel"),
            vmem_limit_bytes=32 * 1024 * 1024,
        ),
    )(w_k, bias2d, x_stream, x_stream)

    conv_out = out_pad if L_pad == L else out_pad[..., :L]
    return x_padded, conv_out


if __name__ == "__main__":
    # small shapes consistent with the module: batch=2, channels=4, length=16
    N, C, L = 2, 4, 16
    adjacent = 2
    K = 2 * adjacent + 1

    key = jax.random.PRNGKey(0)
    kx, kw, kb = jax.random.split(key, 3)

    x = jax.random.normal(kx, (N, C, L), dtype=jnp.float32)
    # deterministic parameter init (nn.Conv1d-like scale)
    fan_in = C * K
    bound = 1.0 / (fan_in ** 0.5)
    weight = jax.random.uniform(kw, (C, C, K), jnp.float32, -bound, bound)
    bias = jax.random.uniform(kb, (C,), jnp.float32, -bound, bound)

    x_padded, conv_out = my_circ_conv(x, weight, bias, adjacent)
    jax.block_until_ready((x_padded, conv_out))

    assert x_padded.shape == (N, C, L + 2 * adjacent)
    assert conv_out.shape == (N, C, L)

    # circular-pad semantics check
    assert jnp.array_equal(x_padded[..., adjacent:adjacent + L], x)
    assert jnp.array_equal(x_padded[..., :adjacent], x[..., -adjacent:])
    assert jnp.array_equal(x_padded[..., -adjacent:], x[..., :adjacent])

    # conv reference on bf16-rounded operands (kernel streams bf16, accumulates
    # in f32), so the comparison checks the indexing/layout exactly.
    xr = x_padded.astype(jnp.bfloat16).astype(jnp.float32)
    wr = weight.astype(jnp.bfloat16).astype(jnp.float32)
    ref = jax.lax.conv_general_dilated(
        xr, wr, window_strides=(1,), padding="VALID",
        dimension_numbers=("NCH", "OIH", "NCH"),
        precision=jax.lax.Precision.HIGHEST,
    ) + bias.reshape(1, -1, 1)
    err = float(jnp.max(jnp.abs(conv_out - ref)))
    assert jnp.allclose(conv_out, ref, atol=1e-3, rtol=1e-3), err

    print("KERNEL_OK")
</pallas_src>

<mosaic_0001>
module attributes {stable_mosaic.version = 11 : i64} {
  func.func @_circ_conv_kernel(%arg0: i32, %arg1: i32, %arg2: memref<5x4x4xbf16, #tpu.memory_space<vmem>>, %arg3: memref<4x1xf32, #tpu.memory_space<vmem>>, %arg4: memref<1x4x128xbf16, #tpu.memory_space<vmem>>, %arg5: memref<1x4x128xbf16, #tpu.memory_space<vmem>>, %arg6: memref<1x4x128xf32, #tpu.memory_space<vmem>>) attributes {dimension_semantics = [#tpu.dimension_semantics<parallel>, #tpu.dimension_semantics<parallel>], iteration_bounds = array<i64: 2, 1>, scalar_prefetch = 0 : i64, scratch_operands = 0 : i64, tpu.core_type = #tpu.core_type<tc>, window_params = [{pipeline_mode = #tpu.pipeline_mode<synchronous>, transform_indices = @transform_0, window_bounds = array<i64: 5, 4, 4>}, {pipeline_mode = #tpu.pipeline_mode<synchronous>, transform_indices = @transform_1, window_bounds = array<i64: 4, 1>}, {transform_indices = @transform_2, window_bounds = array<i64: 1, 4, 128>}, {transform_indices = @transform_3, window_bounds = array<i64: 1, 4, 128>}, {transform_indices = @transform_4, window_bounds = array<i64: 1, 4, 128>}]} {
    %c0 = arith.constant 0 : index
    %c0_0 = arith.constant 0 : index
    %c0_1 = arith.constant 0 : index
    %0 = vector.load %arg4[%c0, %c0_0, %c0_1] : memref<1x4x128xbf16, #tpu.memory_space<vmem>>, vector<1x4x128xbf16>
    %1 = vector.shape_cast %0 : vector<1x4x128xbf16> to vector<4x128xbf16>
    %c0_2 = arith.constant 0 : index
    %c0_3 = arith.constant 0 : index
    %c0_4 = arith.constant 0 : index
    %2 = vector.load %arg5[%c0_2, %c0_3, %c0_4] : memref<1x4x128xbf16, #tpu.memory_space<vmem>>, vector<1x4x128xbf16>
    %3 = vector.shape_cast %2 : vector<1x4x128xbf16> to vector<4x128xbf16>
    %4 = tpu.concatenate %1, %3 in 1 : vector<4x128xbf16>, vector<4x128xbf16> -> vector<4x256xbf16>
    %cst = arith.constant 0.000000e+00 : f32
    %5 = vector.broadcast %cst : f32 to vector<4x128xf32>
    %c0_5 = arith.constant 0 : index
    %c0_6 = arith.constant 0 : index
    %c0_7 = arith.constant 0 : index
    %6 = vector.load %arg2[%c0_5, %c0_6, %c0_7] : memref<5x4x4xbf16, #tpu.memory_space<vmem>>, vector<1x4x4xbf16>
    %7 = vector.shape_cast %6 : vector<1x4x4xbf16> to vector<4x4xbf16>
    %8 = vector.extract_strided_slice %4 {offsets = [0, 0], sizes = [4, 128], strides = [1, 1]} : vector<4x256xbf16> to vector<4x128xbf16>
    %cst_8 = arith.constant dense<0.000000e+00> : vector<4x128xf32>
    %9 = tpu.matmul %7, %8, %cst_8 {dimension_numbers = #tpu.dot_dimension_numbers<[1], [0], [0], [1], [0, 0, 1, 1], [], []>} : vector<4x4xbf16>, vector<4x128xbf16>, vector<4x128xf32> -> vector<4x128xf32>
    %10 = arith.addf %5, %9 : vector<4x128xf32>
    %c1 = arith.constant 1 : index
    %c0_9 = arith.constant 0 : index
    %c0_10 = arith.constant 0 : index
    %11 = vector.load %arg2[%c1, %c0_9, %c0_10] : memref<5x4x4xbf16, #tpu.memory_space<vmem>>, vector<1x4x4xbf16>
    %12 = vector.shape_cast %11 : vector<1x4x4xbf16> to vector<4x4xbf16>
    %13 = vector.extract_strided_slice %4 {offsets = [0, 1], sizes = [4, 128], strides = [1, 1]} : vector<4x256xbf16> to vector<4x128xbf16>
    %cst_11 = arith.constant dense<0.000000e+00> : vector<4x128xf32>
    %14 = tpu.matmul %12, %13, %cst_11 {dimension_numbers = #tpu.dot_dimension_numbers<[1], [0], [0], [1], [0, 0, 1, 1], [], []>} : vector<4x4xbf16>, vector<4x128xbf16>, vector<4x128xf32> -> vector<4x128xf32>
    %15 = arith.addf %10, %14 : vector<4x128xf32>
    %c2 = arith.constant 2 : index
    %c0_12 = arith.constant 0 : index
    %c0_13 = arith.constant 0 : index
    %16 = vector.load %arg2[%c2, %c0_12, %c0_13] : memref<5x4x4xbf16, #tpu.memory_space<vmem>>, vector<1x4x4xbf16>
    %17 = vector.shape_cast %16 : vector<1x4x4xbf16> to vector<4x4xbf16>
    %18 = vector.extract_strided_slice %4 {offsets = [0, 2], sizes = [4, 128], strides = [1, 1]} : vector<4x256xbf16> to vector<4x128xbf16>
    %cst_14 = arith.constant dense<0.000000e+00> : vector<4x128xf32>
    %19 = tpu.matmul %17, %18, %cst_14 {dimension_numbers = #tpu.dot_dimension_numbers<[1], [0], [0], [1], [0, 0, 1, 1], [], []>} : vector<4x4xbf16>, vector<4x128xbf16>, vector<4x128xf32> -> vector<4x128xf32>
    %20 = arith.addf %15, %19 : vector<4x128xf32>
    %c3 = arith.constant 3 : index
    %c0_15 = arith.constant 0 : index
    %c0_16 = arith.constant 0 : index
    %21 = vector.load %arg2[%c3, %c0_15, %c0_16] : memref<5x4x4xbf16, #tpu.memory_space<vmem>>, vector<1x4x4xbf16>
    %22 = vector.shape_cast %21 : vector<1x4x4xbf16> to vector<4x4xbf16>
    %23 = vector.extract_strided_slice %4 {offsets = [0, 3], sizes = [4, 128], strides = [1, 1]} : vector<4x256xbf16> to vector<4x128xbf16>
    %cst_17 = arith.constant dense<0.000000e+00> : vector<4x128xf32>
    %24 = tpu.matmul %22, %23, %cst_17 {dimension_numbers = #tpu.dot_dimension_numbers<[1], [0], [0], [1], [0, 0, 1, 1], [], []>} : vector<4x4xbf16>, vector<4x128xbf16>, vector<4x128xf32> -> vector<4x128xf32>
    %25 = arith.addf %20, %24 : vector<4x128xf32>
    %c4 = arith.constant 4 : index
    %c0_18 = arith.constant 0 : index
    %c0_19 = arith.constant 0 : index
    %26 = vector.load %arg2[%c4, %c0_18, %c0_19] : memref<5x4x4xbf16, #tpu.memory_space<vmem>>, vector<1x4x4xbf16>
    %27 = vector.shape_cast %26 : vector<1x4x4xbf16> to vector<4x4xbf16>
    %28 = vector.extract_strided_slice %4 {offsets = [0, 4], sizes = [4, 128], strides = [1, 1]} : vector<4x256xbf16> to vector<4x128xbf16>
    %cst_20 = arith.constant dense<0.000000e+00> : vector<4x128xf32>
    %29 = tpu.matmul %27, %28, %cst_20 {dimension_numbers = #tpu.dot_dimension_numbers<[1], [0], [0], [1], [0, 0, 1, 1], [], []>} : vector<4x4xbf16>, vector<4x128xbf16>, vector<4x128xf32> -> vector<4x128xf32>
    %30 = arith.addf %25, %29 : vector<4x128xf32>
    %c0_21 = arith.constant 0 : index
    %c0_22 = arith.constant 0 : index
    %31 = vector.load %arg3[%c0_21, %c0_22] : memref<4x1xf32, #tpu.memory_space<vmem>>, vector<4x1xf32>
    %32 = vector.broadcast %31 : vector<4x1xf32> to vector<4x128xf32>
    %33 = arith.addf %30, %32 : vector<4x128xf32>
    %c0_23 = arith.constant 0 : index
    %c0_24 = arith.constant 0 : index
    %c0_25 = arith.constant 0 : index
    %34 = vector.load %arg6[%c0_23, %c0_24, %c0_25] : memref<1x4x128xf32, #tpu.memory_space<vmem>>, vector<1x4x128xf32>
    %35 = vector.shape_cast %34 : vector<1x4x128xf32> to vector<4x128xf32>
    %36 = vector.shape_cast %33 : vector<4x128xf32> to vector<1x4x128xf32>
    tpu.vector_store %arg6[%c0_23, %c0_24, %c0_25], %36 {strides = array<i32>} : memref<1x4x128xf32, #tpu.memory_space<vmem>>, vector<1x4x128xf32>,
    return
  }
  func.func @transform_0(%arg0: i32, %arg1: i32) -> (i32, i32, i32) {
    %c0_i32 = arith.constant 0 : i32
    %c0_i32_0 = arith.constant 0 : i32
    %c0_i32_1 = arith.constant 0 : i32
    %c0_i32_2 = arith.constant 0 : i32
    return %c0_i32, %c0_i32_0, %c0_i32_1 : i32, i32, i32
  }
  func.func @transform_1(%arg0: i32, %arg1: i32) -> (i32, i32) {
    %c0_i32 = arith.constant 0 : i32
    %c0_i32_0 = arith.constant 0 : i32
    %c0_i32_1 = arith.constant 0 : i32
    return %c0_i32, %c0_i32_0 : i32, i32
  }
  func.func @transform_2(%arg0: i32, %arg1: i32) -> (i32, i32, i32) {
    %c0_i32 = arith.constant 0 : i32
    %c0_i32_0 = arith.constant 0 : i32
    return %arg0, %c0_i32, %arg1 : i32, i32, i32
  }
  func.func @transform_3(%arg0: i32, %arg1: i32) -> (i32, i32, i32) {
    %c1_i32 = arith.constant 1 : i32
    %0 = arith.addi %arg1, %c1_i32 : i32
    %c1_i32_0 = arith.constant 1 : i32
    %1 = arith.muli %0, %c1_i32_0 : i32
    %c0_i32 = arith.constant 0 : i32
    %c0_i32_1 = arith.constant 0 : i32
    return %arg0, %c0_i32, %1 : i32, i32, i32
  }
  func.func @transform_4(%arg0: i32, %arg1: i32) -> (i32, i32, i32) {
    %c0_i32 = arith.constant 0 : i32
    %c0_i32_0 = arith.constant 0 : i32
    return %arg0, %c0_i32, %arg1 : i32, i32, i32
  }
}

</mosaic_0001>

<bundles_post_ra>
// kernel: tpu_custom_call.1
= control target key start
LH: loop header
LB: loop body
LE: loop exit
PB: predicated region body
PF: predicated region fallthrough
CT: control target
= control target key end

     0   :  { %9 = vsyncpa [#allocation3], 0  ;;  %s1048_s0 = inlined_call_operand.vmem [shape: bf16[5,4,4], index: 0, kind: input, shape index: {}]   ;;  %s1049_s1 = inlined_call_operand.vmem [shape: f32[4,1], index: 1, kind: input, shape index: {}]   ;;  %s1050_s2 = inlined_call_operand.vmem [shape: bf16[2,4,256], index: 2, kind: input, shape index: {}]   ;;  %s1051_s3 = inlined_call_operand.vmem [shape: bf16[2,4,256], index: 3, kind: input, shape index: {}]   ;;  %s1052_s4 = inlined_call_operand.hbm [shape: f32[2,4,128], index: 4, kind: output, shape index: {}]  }
   0x1   :  { %11 = vsyncpa [#allocation3 + $0x1], 0  ;;  %s890_s15 = smov 0   ;;  %s892_s16 = smov 0  }
   0x2   :  { %s894_s17 = smov 0   ;;  %s896_s18 = smov 0  }
   0x3   :  { %s898_s19 = smov 0   ;;  %s900_s20 = smov 0  }
   0x4 LB: > { %s647_s21 = sadd.s32 4294967295, %s855_s20   ;;  %s648_s22 = sadd.s32 4294967294, %s855_s20   ;;  %s855_s20 = sphi %s900_s20, %s17_s20   ;;  %s851_s19 = sphi %s898_s19, %s1059_s19   ;;  %s847_s18 = sphi %s896_s18, %s1058_s18   ;;  %s843_s17 = sphi %s894_s17, %s1057_s17   ;;  %s839_s16 = sphi %s892_s16, %s1056_s16   ;;  %s835_s15 = sphi %s890_s15, %s1055_s15  }
   0x5   : > { %s29_s23 = sadd.s32 1, %s851_s19  ;;  %s138_s24 = sadd.s32 1, %s843_s17 }
   0x6   : > { %p31_p0 = scmp.ge.s32.totalorder %s29_s23, 2  ;;  %p148_p1 = scmp.ne.s32.totalorder %s843_s17, %s839_s16 }
   0x7   : > { %p149_p2 = scmp.eq.s32.totalorder %s647_s21, 1  ;;  %p154_p3 = scmp.ne.s32.totalorder %s839_s16, %s835_s15 }
   0x8   : > { %s1061_s23 = smov (%p31_p0, %s29_s23), 0  ;;  %p155_p5 = scmp.eq.s32.totalorder %s648_s22, 1 }
   0x9   : > { %p930_p4 = por %p149_p2, %p148_p1  ;;  %s133_s26 = ssub.s32 %s851_s19, %s1061_s23 }
   0xa   : > { %p651_p6 = scmp.ge.s32.totalorder %s855_s20, 1  ;;  %p136_p7 = scmp.eq.s32.totalorder %s133_s26, 0 }
   0xb   : > { %p937_p8 = por %p155_p5, %p154_p3  ;;  %p203_p9 = scmp.lt.s32.totalorder %s855_s20, 3 }
   0xc   : > { %s943_s28 = scalar_select %p136_p7, %s843_s17, %s138_s24  }
   0xd   : > { %p204_p10 = pnand %p651_p6, %p203_p9 }
   0xe   : > { %p241_p11 = scmp.lt.s32.totalorder (!%p204_p10), %s847_s18, 1  ;;  %v857_v0 = vmov (!%p204_p10), 0.0   ;;  %vm858_vm0 = vmmov (!%p204_p10), 0   ;;  %vm277_vm1 = vcmask (!%p204_p10), 1041408   ;;  %s859_s12 = smov (!%p204_p10), 126   ;;  %vm273_vm2 = vcmask (!%p204_p10), 31744  }
   0xf   : > { %207 = sbr.rel (%p204_p10) target bundleno = 397 (0x18d), region = 36  ;;  %684 = vmatprep.subr.bf16.mxu0 (!%p204_p10), %v857_v0  ;;  %690 = vmatprep.subr.bf16.mxu1 (!%p204_p10), %v857_v0  ;;  %s860_s13 = smov (!%p204_p10), 127   ;;  %v262_v4 = vld [vmem:[%s1048_s0] sm:$0x3] (!%p204_p10)  ;;  %v863_v5 = vmov (!%p204_p10), 0   ;;  %vm373_vm3 = vcmask (!%p204_p10), 1031168  }
  0x10   : > { %686 = vmatprep.mubr.msk.bf16.mxu0 (!%p204_p10), %vm858_vm0, %v857_v0  ;;  %692 = vmatprep.mubr.msk.bf16.mxu1 (!%p204_p10), %vm858_vm0, %v857_v0  ;;  %s861_s22 = smov (!%p204_p10), 125   ;;  %s862_s24 = smov (!%p204_p10), 124   ;;  %v532_v6 = vld [vmem:[%s1049_s1] sm:$0xf] (!%p204_p10)  ;;  %vm271_vm4 = vcmask (!%p204_p10), 1039360   ;;  %vm428_vm5 = vcmask (!%p204_p10), 1022976  }
  0x11   : > { %776 = vset.pattern.permute.xlu0 (!%p204_p10), %v863_v5  ;;  %v657_v14 = vld [vmem:[%s1048_s0 + $0x2] sm:$0x3] (!%p204_p10)  ;;  %vm483_vm6 = vcmask (!%p204_p10), 1014784   ;;  %v662_v20 = vld [vmem:[%s1048_s0 + $0x6] sm:$0x3] (!%p204_p10)  ;;  %s667_s14 = sshll.u32 (!%p204_p10), %s847_s18, 6 }
  0x12   : > { %v660_v24 = vld [vmem:[%s1048_s0 + $0x4] sm:$0x3] (!%p204_p10)  ;;  %v664_v26 = vld [vmem:[%s1048_s0 + $0x8] sm:$0x3] (!%p204_p10)  ;;  %s864_s5 = smov (!%p204_p10), [#allocation2]  }
  0x13   : > { %s781_s6 = sshll.u32 (!%p204_p10), %s864_s5, 4  ;;  %s782_s6 = int_to_ptr.vmem [resolvable:$false] %s781_s6 }
  0x16   : > { %s242_s29 = scalar_select %p241_p11, %s847_s18, 1 }
  0x18   : > { %s670_s30 = sshll.u32 %s242_s29, 2  ;;  %s1001_s29 = scalar_lea.hbm %s1052_s4, %s667_s14 }
  0x19   : > { %s248_s7 = scalar_lea.vmem %s1050_s2, %s670_s30  ;;  %s672_s8 = sadd.s32 2, %s670_s30 }
  0x1a   : > { %v260_v1 = vld [vmem:[%s248_s7] sm:$0x3]  ;;  %s257_s11 = scalar_lea.vmem %s1051_s3, %s672_s8  ;;  %s783_s7 = scalar_lea.vmem %s782_s6, 128 }
  0x1b   : > { %369 = vrot.lane.b32.xlu1 %v260_v1, %s859_s12  ;;  %267 = vrot.lane.b32.xlu0 %v260_v1, %s860_s13  ;;  %v325_v2 = vsel %vm277_vm1, %v260_v1, 0  ;;  %v261_v3 = vld [vmem:[%s257_s11] sm:$0x3] }
  0x1c   : > { %691 = vmatpush3.bf16.msra.mxu1 %v325_v2 }
  0x1d   : > { %702 = vmatprep.subr.bf16.mxu1 %v857_v0 }
  0x1f   : > { %371 = vrot.lane.b32.xlu1 %v261_v3, %s859_s12  ;;  %269 = vrot.lane.b32.xlu0 %v261_v3, %s860_s13  ;;  %s238_s12 = sand.u32 1, %s839_s16  }
  0x20   : > { %693 = vmatmul.mubr.msk.bf16.vlgmr.msra.gmra.mrb[0].mxu1 %vm273_vm2, %v262_v4  ;;  %s652_s13 = sshll.u32 %s238_s12, 2  ;;  %s541_s30 = scalar_lea.sflag [#allocation3], %s238_s12 }
  0x21   : > { %704 = vmatprep.mubr.msk.bf16.mxu1 %vm858_vm0, %v857_v0  ;;  %s240_s21 = scalar_lea.vmem [#allocation2], %s652_s13 }
  0x23   : > { %426 = vrot.lane.b32.xlu1 %v261_v3, %s861_s22  ;;  %424 = vrot.lane.b32.xlu0 %v260_v1, %s861_s22  ;;  %s555_s22 = sshll.u32 %s240_s21, 4  ;;  %s1003_s22 = int_to_ptr.vmem [resolvable:$true] %s555_s22 }
  0x24   : > { %s777_s18 = scalar_lea.vmem %s1003_s22, 64  ;;  %p784_p1 = scmp.lt.s32.totalorder %s1003_s22, %s782_s6 }
  0x25   : > { %p778_p12 = scmp.ne.s32.totalorder %s1003_s22, %s777_s18  ;;  %p785_p2 = scmp.lt.s32.totalorder %s783_s7, %s777_s18 }
  0x27   : > { %481 = vrot.lane.b32.xlu1 %v261_v3, %s862_s24  ;;  %479 = vrot.lane.b32.xlu0 %v260_v1, %s862_s24  ;;  %p779_p13 = pnand %p778_p12, %p930_p4  ;;  %p786_p3 = por %p785_p2, %p784_p1 }
  0x29   : > { %p780_p0 = pneg %p779_p13 }
  0x2b   : > { %535 = vperm.xlu0 %776, %v532_v6   ;;  %p787_p5 = pnand %p786_p3, %p780_p0 }
  0x8d   : > { %v370_v7 = vpop.permute.xlu1 %369  ;;  %v268_v8 = vpop.permute.xlu0 %267 }
  0x91   : > { %v372_v9 = vpop.permute.xlu1 %371  ;;  %v270_v10 = vpop.permute.xlu0 %269 }
  0x92   : > { %v374_v11 = vsel %vm373_vm3, %v370_v7, %v372_v9  ;;  %v272_v12 = vsel %vm271_vm4, %v268_v8, %v270_v10 }
  0x93   : > { %v279_v13 = vsel %vm277_vm1, %v272_v12, 0  ;;  %v379_v15 = vsel %vm277_vm1, %v374_v11, 0 }
  0x94   : > { %685 = vmatpush3.bf16.msra.mxu0 %v279_v13 }
  0x95   : > { %696 = vmatprep.subr.bf16.mxu0 %v857_v0  ;;  %v427_v16 = vpop.permute.xlu1 %426  ;;  %v425_v17 = vpop.permute.xlu0 %424 }
  0x96   : > { %v429_v18 = vsel %vm428_vm5, %v425_v17, %v427_v16 }
  0x97   : > { %687 = vmatmul.mubr.msk.bf16.vlgmr.msra.gmra.mrb[0].mxu0 %vm273_vm2, %v657_v14  ;;  %v434_v19 = vsel %vm277_vm1, %v429_v18, 0 }
  0x98   : > { %697 = vmatpush3.bf16.msra.mxu0 %v379_v15  ;;  %703 = vmatpush3.bf16.msra.mxu1 %v434_v19 }
  0x99   : > { %v482_v21 = vpop.permute.xlu1 %481  ;;  %v480_v22 = vpop.permute.xlu0 %479  ;;  %698 = vmatprep.mubr.msk.bf16.mxu0 %vm858_vm0, %v857_v0  ;;  %708 = vmatprep.subr.bf16.mxu0 %v857_v0 }
  0x9a   : > { %v484_v23 = vsel %vm483_vm6, %v480_v22, %v482_v21 }
  0x9b   : > { %705 = vmatmul.mubr.msk.bf16.vlgmr.msra.gmra.mrb[4].mxu1 %vm273_vm2, %v662_v20  ;;  %v489_v25 = vsel %vm277_vm1, %v484_v23, 0 }
  0x9f   : > { %699 = vmatmul.mubr.msk.bf16.vlgmr.msra.gmra.mrb[4].mxu0 %vm273_vm2, %v660_v24 }
  0xa0   : > { %709 = vmatpush3.bf16.msra.mxu0 %v489_v25  ;;  %710 = vmatprep.mubr.msk.bf16.mxu0 %vm858_vm0, %v857_v0 }
  0xa7   : > { %711 = vmatmul.mubr.msk.bf16.vlgmr.msra.gmra.mrb[8].mxu0 %vm273_vm2, %v664_v26 }
  0xaa   : > { %v536_v47 = vpop.permute.xlu0 %535 }
  0xf3   : > { %v361_v27 = vpop.f32.mrb[0].mxu1 }
  0xf4   : > { %v694_v28 = vpop.f32.mrb[1].mxu1 }
  0xf5   : > { %v364_v29 = vpop.f32.mrb[2].mxu1 }
  0xf6   : > { %v695_v30 = vpop.f32.mrb[3].mxu1 }
 0x16a   : > { %v315_v31 = vpop.f32.mrb[0].mxu0 }
 0x16b   : > { %v688_v32 = vpop.f32.mrb[1].mxu0  ;;  %v362_v33 = vadd.f32 %v361_v27, %v315_v31 }
 0x16c   : > { %v318_v34 = vpop.f32.mrb[2].mxu0 }
 0x16d   : > { %v689_v35 = vpop.f32.mrb[3].mxu0 }
 0x16e   : > { %v470_v36 = vpop.f32.mrb[4].mxu1 }
 0x16f   : > { %v706_v37 = vpop.f32.mrb[5].mxu1 }
 0x170   : > { %v473_v38 = vpop.f32.mrb[6].mxu1 }
 0x171   : > { %v707_v39 = vpop.f32.mrb[7].mxu1 }
 0x172   : > { %v415_v40 = vpop.f32.mrb[4].mxu0 }
 0x173   : > { %v421_v41 = vadd.f32 %v415_v40, %v362_v33  ;;  %v700_v42 = vpop.f32.mrb[5].mxu0 }
 0x174   : > { %v418_v43 = vpop.f32.mrb[6].mxu0 }
 0x175   : > { %v476_v44 = vadd.f32 %v470_v36, %v421_v41  ;;  %v701_v45 = vpop.f32.mrb[7].mxu0 }
 0x17a   : > { %v525_v46 = vpop.f32.mrb[8].mxu0 }
 0x17b   : > { %v531_v48 = vadd.f32 %v525_v46, %v476_v44  ;;  %v712_v49 = vpop.f32.mrb[9].mxu0 }
 0x17c   : > { %v528_v50 = vpop.f32.mrb[10].mxu0 }
 0x17d   : > { %v538_v51 = vadd.f32 %v536_v47, %v531_v48  ;;  %v713_v52 = vpop.f32.mrb[11].mxu0 }
 0x17f   : > { %539 = vst [vmem:[%s240_s21] sm:$0xf] %v538_v51 }
 0x180   : > { %790 = shalt.err (!%p787_p5)
}
 0x181   : > { %s791_s8 = scalar_lea.hbm %s1001_s29, 64  ;;  %s795_s11 = scalar_lea.hbm %s1052_s4, 128 }
 0x182   : > { %p792_p6 = scmp.ne.s32.totalorder %s1001_s29, %s791_s8  ;;  %p796_p10 = scmp.lt.u32.totalorder %s1001_s29, %s1052_s4 }
 0x183   : > { %p797_p11 = scmp.lt.u32.totalorder %s795_s11, %s791_s8  ;;  %p799_p13 = scmp.lt.u32.totalorder %s791_s8, %s1001_s29 }
 0x184   : > { %p793_p7 = pnand %p792_p6, %p930_p4 }
 0x185   : > { %p798_p12 = por %p797_p11, %p796_p10 }
 0x186   : > { %p794_p9 = pneg %p793_p7 }
 0x187   : > { %p800_p0 = por %p799_p13, %p798_p12 }
 0x189   : > { %p801_p1 = pnand %p800_p0, %p794_p9 }
 0x18b   : > { %804 = shalt.err (!%p801_p1)
}
 0x18c   : > { %714 = dma.vmem_to_hbm [thread:$0]  (%p930_p4), %s1003_s22, 64, %s1001_s29, %s541_s30  }
 0x18d PF: > { %p720_p2 = scmp.ge.s32.totalorder %s855_s20, 2  ;;  %s567_s14 = sand.u32 1, %s835_s15  }
 0x18e   : > { %s568_s21 = scalar_lea.sflag [#allocation3], %s567_s14 }
 0x18f   : > { %p717_p3 = pnand %p720_p2, %p937_p8 }
 0x191   : > { %830 = dma.done.wait (!%p717_p3), %s568_s21, 64  }
 0x192   : > { %832 = vsyncadd (!%p717_p3), %s568_s21, 4294967232  ;;  %s17_s20 = sadd.s32 1, %s855_s20   ;;  %s1055_s15 = smov %s839_s16 }
 0x193   : > { %p14_p5 = scmp.ge.s32.totalorder %s17_s20, 4   ;;  %s1056_s16 = smov %s843_s17 }
 0x194   : > { %s1057_s17 = smov %s943_s28  ;;  %s1058_s18 = smov %s851_s19 }
 0x195   : > { %s1059_s19 = smov %s1061_s23  ;;  %16 = sbr.rel (!%p14_p5) target bundleno = 4 (0x4), region = 78 }
 0x19c   :  { %573 = vsyncpa [#allocation3], 1 }
 0x19d   :  { %575 = vsyncpa [#allocation3 + $0x1], 1 }

</bundles_post_ra>
